<compile_context>
chip_gen: v7x
topology: tpu7x:2x2x1
jax: 0.10.0
libtpu: 0.0.40
codegen_flags: <defaults>
</compile_context>

<pallas_src>
import jax
import jax.numpy as jnp
from jax import lax
from jax.experimental import pallas as pl
from jax.experimental.pallas import tpu as pltpu


def _comparator_kernel(cv_ref, job_ref, w1_ref, b1_ref, w2_ref, b2_ref, sim_ref):
    """Siamese MLP encoder + cosine similarity for one batch tile."""
    w1 = w1_ref[...]
    b1 = b1_ref[...]
    w2 = w2_ref[...]
    b2 = b2_ref[...]

    def encode(x):
        # FFN block 1 (embedding block): Linear + ReLU
        h = jnp.dot(x, w1, preferred_element_type=jnp.float32) + b1
        h = jnp.maximum(h, 0.0)
        # Readout block: Linear
        return jnp.dot(h, w2, preferred_element_type=jnp.float32) + b2

    a = encode(cv_ref[...])     # (TB, E)  cv embeddings
    b = encode(job_ref[...])    # (TB, E)  job embeddings

    # CosineSimilarity(dim=1, eps=1e-12): per-row reductions only, so garbage
    # rows of a ragged last tile never contaminate valid rows.
    eps2 = jnp.float32(1e-24)                    # eps**2, eps = 1e-12
    na2 = jnp.sum(a * a, axis=1)                 # (TB,)
    nb2 = jnp.sum(b * b, axis=1)                 # (TB,)
    dot = jnp.sum(a * b, axis=1)                 # (TB,)

    # rsqrt goes to the (otherwise idle) EUP slot.
    inv = lax.rsqrt(jnp.maximum(na2, eps2)) * lax.rsqrt(jnp.maximum(nb2, eps2))
    # Lane-dense store: one (1, TB) row -> unmasked vst + dense writeback DMA.
    sim_ref[...] = (dot * inv).reshape(1, -1)


def _pick_batch_tile(B, block_b):
    """Batch tile selection.

    Small batches (B <= 256) use a single full tile (block == full array dim,
    so no (8,128) divisibility constraint).  Larger batches tile in multiples
    of 128 (lane-dense output blocks), capped at block_b and at B//2 so the
    grid keeps >= 2 steps and the "parallel" batch axis can shard across both
    TensorCores on v7x.
    """
    if B <= 256:
        return B
    tb_cap = (B // 2) // 128 * 128          # guarantees >= 2 grid steps
    tb_req = max(128, (block_b // 128) * 128)
    return max(128, min(tb_req, tb_cap))


def _vmem_estimate(tb, D, H, E, grid_steps):
    """Rough VMEM footprint (bytes) for the chosen tile."""
    dsize = 4  # f32
    nbuf = 2 if grid_steps > 1 else 1
    acts = nbuf * 2 * tb * D * dsize                 # cv/job tiles (double-buffered)
    params = 2 * (D * H + H + H * E + E) * dsize     # resident weights/biases
    interm = 2 * tb * (H + E) * dsize                # hidden + embedding per branch
    out = nbuf * tb * dsize                          # sim tile
    return acts + params + interm + out


def comparator_forward(cv, job, w1, b1, w2, b2, *, block_b=1024):
    """Comparator forward pass (label=None path) -> sim of shape [B]."""
    B, D = cv.shape
    H = w1.shape[1]
    E = w2.shape[1]

    tb = _pick_batch_tile(B, block_b)
    grid_steps = pl.cdiv(B, tb)

    b1_2d = b1.reshape(1, H)
    b2_2d = b2.reshape(1, E)

    # Modest scoped-VMEM request: generous headroom over the estimate, but
    # capped at 32 MiB (kernel footprint is a few MiB even at TB=2048).
    est = _vmem_estimate(tb, D, H, E, grid_steps)
    vmem_limit = int(min(32 << 20, max(4 * est, 8 << 20)))

    # NOTE: weights/biases keep constant index_maps (no re-DMA across steps).
    # pipeline_mode=pl.Buffered(1) on them would shave ~33 KiB of VMEM; left
    # at the default double-buffering since it is negligible here.
    sim = pl.pallas_call(
        _comparator_kernel,
        out_shape=jax.ShapeDtypeStruct((1, B), jnp.float32),
        grid=(grid_steps,),
        in_specs=[
            pl.BlockSpec((tb, D), lambda i: (i, 0)),   # cv tile (pipelined)
            pl.BlockSpec((tb, D), lambda i: (i, 0)),   # job tile (pipelined)
            pl.BlockSpec((D, H), lambda i: (0, 0)),    # w1 (VMEM-resident)
            pl.BlockSpec((1, H), lambda i: (0, 0)),    # b1
            pl.BlockSpec((H, E), lambda i: (0, 0)),    # w2
            pl.BlockSpec((1, E), lambda i: (0, 0)),    # b2
        ],
        out_specs=pl.BlockSpec((1, tb), lambda i: (0, i)),   # lane-dense sim row
        compiler_params=pltpu.CompilerParams(
            dimension_semantics=("parallel",),
            vmem_limit_bytes=vmem_limit,
        ),
    )(cv, job, w1, b1_2d, w2, b2_2d)
    return sim[0, :]


def _reference_forward(cv, job, w1, b1, w2, b2):
    """Plain-JAX reference for correctness checking."""
    def encode(x):
        h = jnp.maximum(x @ w1 + b1, 0.0)
        return h @ w2 + b2
    a = encode(cv)
    b = encode(job)
    eps = 1e-12
    num = jnp.sum(a * b, axis=1)
    den = jnp.maximum(jnp.linalg.norm(a, axis=1), eps) * \
          jnp.maximum(jnp.linalg.norm(b, axis=1), eps)
    return num / den


if __name__ == "__main__":
    key = jax.random.PRNGKey(0)
    D, H, E = 32, 64, 32   # input dim, hidden, embedding

    k_cv, k_job, k_w1, k_b1, k_w2, k_b2 = jax.random.split(key, 6)

    # Deterministic synthetic encoder parameters (siamese: shared by cv/job).
    w1 = jax.random.normal(k_w1, (D, H), dtype=jnp.float32) * 0.1
    b1 = jax.random.normal(k_b1, (H,), dtype=jnp.float32) * 0.01
    w2 = jax.random.normal(k_w2, (H, E), dtype=jnp.float32) * 0.1
    b2 = jax.random.normal(k_b2, (E,), dtype=jnp.float32) * 0.01

    # Small demo batch: single-tile path (grid=(1,)).
    B = 8
    cv = jax.random.normal(k_cv, (B, D), dtype=jnp.float32)
    job = jax.random.normal(k_job, (B, D), dtype=jnp.float32)

    sim = comparator_forward(cv, job, w1, b1, w2, b2)
    sim = jax.block_until_ready(sim)
    ref = _reference_forward(cv, job, w1, b1, w2, b2)
    assert sim.shape == (B,), sim.shape
    assert jnp.allclose(sim, ref, atol=1e-5, rtol=1e-5), (sim, ref)

    # Larger, non-divisible batch: multi-step pipelined grid with a ragged
    # last tile (no host-side padding; OOB rows are computed on garbage and
    # discarded by the masked output write of the partial block).
    B2 = 300
    cv2 = jax.random.normal(k_cv, (B2, D), dtype=jnp.float32)
    job2 = jax.random.normal(k_job, (B2, D), dtype=jnp.float32)
    sim2 = comparator_forward(cv2, job2, w1, b1, w2, b2)
    sim2 = jax.block_until_ready(sim2)
    ref2 = _reference_forward(cv2, job2, w1, b1, w2, b2)
    assert sim2.shape == (B2,), sim2.shape
    assert jnp.allclose(sim2, ref2, atol=1e-5, rtol=1e-5), (sim2, ref2)

    print("KERNEL_OK")
</pallas_src>

<mosaic_0001>
module attributes {stable_mosaic.version = 11 : i64} {
  func.func @_comparator_kernel(%arg0: i32, %arg1: memref<8x32xf32, #tpu.memory_space<vmem>>, %arg2: memref<8x32xf32, #tpu.memory_space<vmem>>, %arg3: memref<32x64xf32, #tpu.memory_space<vmem>>, %arg4: memref<1x64xf32, #tpu.memory_space<vmem>>, %arg5: memref<64x32xf32, #tpu.memory_space<vmem>>, %arg6: memref<1x32xf32, #tpu.memory_space<vmem>>, %arg7: memref<1x8xf32, #tpu.memory_space<vmem>>) attributes {dimension_semantics = [#tpu.dimension_semantics<parallel>], iteration_bounds = array<i64: 1>, scalar_prefetch = 0 : i64, scratch_operands = 0 : i64, tpu.core_type = #tpu.core_type<tc>, window_params = [{transform_indices = @transform_0, window_bounds = array<i64: 8, 32>}, {transform_indices = @transform_1, window_bounds = array<i64: 8, 32>}, {pipeline_mode = #tpu.pipeline_mode<synchronous>, transform_indices = @transform_2, window_bounds = array<i64: 32, 64>}, {pipeline_mode = #tpu.pipeline_mode<synchronous>, transform_indices = @transform_3, window_bounds = array<i64: 1, 64>}, {pipeline_mode = #tpu.pipeline_mode<synchronous>, transform_indices = @transform_4, window_bounds = array<i64: 64, 32>}, {pipeline_mode = #tpu.pipeline_mode<synchronous>, transform_indices = @transform_5, window_bounds = array<i64: 1, 32>}, {transform_indices = @transform_6, window_bounds = array<i64: 1, 8>}]} {
    %c0 = arith.constant 0 : index
    %c0_0 = arith.constant 0 : index
    %0 = vector.load %arg3[%c0, %c0_0] : memref<32x64xf32, #tpu.memory_space<vmem>>, vector<32x64xf32>
    %c0_1 = arith.constant 0 : index
    %c0_2 = arith.constant 0 : index
    %1 = vector.load %arg4[%c0_1, %c0_2] : memref<1x64xf32, #tpu.memory_space<vmem>>, vector<1x64xf32>
    %c0_3 = arith.constant 0 : index
    %c0_4 = arith.constant 0 : index
    %2 = vector.load %arg5[%c0_3, %c0_4] : memref<64x32xf32, #tpu.memory_space<vmem>>, vector<64x32xf32>
    %c0_5 = arith.constant 0 : index
    %c0_6 = arith.constant 0 : index
    %3 = vector.load %arg6[%c0_5, %c0_6] : memref<1x32xf32, #tpu.memory_space<vmem>>, vector<1x32xf32>
    %c0_7 = arith.constant 0 : index
    %c0_8 = arith.constant 0 : index
    %4 = vector.load %arg1[%c0_7, %c0_8] : memref<8x32xf32, #tpu.memory_space<vmem>>, vector<8x32xf32>
    %cst = arith.constant dense<0.000000e+00> : vector<8x64xf32>
    %5 = tpu.matmul %4, %0, %cst {dimension_numbers = #tpu.dot_dimension_numbers<[1], [0], [0], [1], [0, 0, 1, 1], [], []>} : vector<8x32xf32>, vector<32x64xf32>, vector<8x64xf32> -> vector<8x64xf32>
    %6 = vector.broadcast %1 : vector<1x64xf32> to vector<8x64xf32>
    %7 = arith.addf %5, %6 : vector<8x64xf32>
    %cst_9 = arith.constant 0.000000e+00 : f32
    %8 = vector.broadcast %cst_9 : f32 to vector<8x64xf32>
    %9 = arith.maximumf %7, %8 : vector<8x64xf32>
    %cst_10 = arith.constant dense<0.000000e+00> : vector<8x32xf32>
    %10 = tpu.matmul %9, %2, %cst_10 {dimension_numbers = #tpu.dot_dimension_numbers<[1], [0], [0], [1], [0, 0, 1, 1], [], []>} : vector<8x64xf32>, vector<64x32xf32>, vector<8x32xf32> -> vector<8x32xf32>
    %11 = vector.broadcast %3 : vector<1x32xf32> to vector<8x32xf32>
    %12 = arith.addf %10, %11 : vector<8x32xf32>
    %c0_11 = arith.constant 0 : index
    %c0_12 = arith.constant 0 : index
    %13 = vector.load %arg2[%c0_11, %c0_12] : memref<8x32xf32, #tpu.memory_space<vmem>>, vector<8x32xf32>
    %cst_13 = arith.constant dense<0.000000e+00> : vector<8x64xf32>
    %14 = tpu.matmul %13, %0, %cst_13 {dimension_numbers = #tpu.dot_dimension_numbers<[1], [0], [0], [1], [0, 0, 1, 1], [], []>} : vector<8x32xf32>, vector<32x64xf32>, vector<8x64xf32> -> vector<8x64xf32>
    %15 = vector.broadcast %1 : vector<1x64xf32> to vector<8x64xf32>
    %16 = arith.addf %14, %15 : vector<8x64xf32>
    %cst_14 = arith.constant 0.000000e+00 : f32
    %17 = vector.broadcast %cst_14 : f32 to vector<8x64xf32>
    %18 = arith.maximumf %16, %17 : vector<8x64xf32>
    %cst_15 = arith.constant dense<0.000000e+00> : vector<8x32xf32>
    %19 = tpu.matmul %18, %2, %cst_15 {dimension_numbers = #tpu.dot_dimension_numbers<[1], [0], [0], [1], [0, 0, 1, 1], [], []>} : vector<8x64xf32>, vector<64x32xf32>, vector<8x32xf32> -> vector<8x32xf32>
    %20 = vector.broadcast %3 : vector<1x32xf32> to vector<8x32xf32>
    %21 = arith.addf %19, %20 : vector<8x32xf32>
    %22 = arith.mulf %12, %12 : vector<8x32xf32>
    %cst_16 = arith.constant dense<0.000000e+00> : vector<8xf32>
    %23 = vector.multi_reduction <add>, %22, %cst_16 [1] : vector<8x32xf32> to vector<8xf32>
    %24 = arith.mulf %21, %21 : vector<8x32xf32>
    %cst_17 = arith.constant dense<0.000000e+00> : vector<8xf32>
    %25 = vector.multi_reduction <add>, %24, %cst_17 [1] : vector<8x32xf32> to vector<8xf32>
    %26 = arith.mulf %12, %21 : vector<8x32xf32>
    %cst_18 = arith.constant dense<0.000000e+00> : vector<8xf32>
    %27 = vector.multi_reduction <add>, %26, %cst_18 [1] : vector<8x32xf32> to vector<8xf32>
    %cst_19 = arith.constant 1.000000e-24 : f32
    %28 = vector.broadcast %cst_19 : f32 to vector<8xf32>
    %29 = arith.maximumf %23, %28 : vector<8xf32>
    %30 = math.rsqrt %29 : vector<8xf32>
    %cst_20 = arith.constant 1.000000e-24 : f32
    %31 = vector.broadcast %cst_20 : f32 to vector<8xf32>
    %32 = arith.maximumf %25, %31 : vector<8xf32>
    %33 = math.rsqrt %32 : vector<8xf32>
    %34 = arith.mulf %30, %33 : vector<8xf32>
    %35 = arith.mulf %27, %34 : vector<8xf32>
    %36 = vector.shape_cast %35 : vector<8xf32> to vector<1x8xf32>
    %c0_21 = arith.constant 0 : index
    %c0_22 = arith.constant 0 : index
    %37 = vector.load %arg7[%c0_21, %c0_22] : memref<1x8xf32, #tpu.memory_space<vmem>>, vector<1x8xf32>
    tpu.vector_store %arg7[%c0_21, %c0_22], %36 {strides = array<i32>} : memref<1x8xf32, #tpu.memory_space<vmem>>, vector<1x8xf32>,
    return
  }
  func.func @transform_0(%arg0: i32) -> (i32, i32) {
    %c0_i32 = arith.constant 0 : i32
    %c0_i32_0 = arith.constant 0 : i32
    return %arg0, %c0_i32 : i32, i32
  }
  func.func @transform_1(%arg0: i32) -> (i32, i32) {
    %c0_i32 = arith.constant 0 : i32
    %c0_i32_0 = arith.constant 0 : i32
    return %arg0, %c0_i32 : i32, i32
  }
  func.func @transform_2(%arg0: i32) -> (i32, i32) {
    %c0_i32 = arith.constant 0 : i32
    %c0_i32_0 = arith.constant 0 : i32
    %c0_i32_1 = arith.constant 0 : i32
    return %c0_i32, %c0_i32_0 : i32, i32
  }
  func.func @transform_3(%arg0: i32) -> (i32, i32) {
    %c0_i32 = arith.constant 0 : i32
    %c0_i32_0 = arith.constant 0 : i32
    %c0_i32_1 = arith.constant 0 : i32
    return %c0_i32, %c0_i32_0 : i32, i32
  }
  func.func @transform_4(%arg0: i32) -> (i32, i32) {
    %c0_i32 = arith.constant 0 : i32
    %c0_i32_0 = arith.constant 0 : i32
    %c0_i32_1 = arith.constant 0 : i32
    return %c0_i32, %c0_i32_0 : i32, i32
  }
  func.func @transform_5(%arg0: i32) -> (i32, i32) {
    %c0_i32 = arith.constant 0 : i32
    %c0_i32_0 = arith.constant 0 : i32
    %c0_i32_1 = arith.constant 0 : i32
    return %c0_i32, %c0_i32_0 : i32, i32
  }
  func.func @transform_6(%arg0: i32) -> (i32, i32) {
    %c0_i32 = arith.constant 0 : i32
    %c0_i32_0 = arith.constant 0 : i32
    return %c0_i32, %arg0 : i32, i32
  }
}

</mosaic_0001>

<bundles_post_ra>
// kernel: tpu_custom_call.1
= control target key start
LH: loop header
LB: loop body
LE: loop exit
PB: predicated region body
PF: predicated region fallthrough
CT: control target
= control target key end

     0   :  { %v552_v3 = vmov 0.0|0.0   ;;  %vm553_vm0 = vmmov 0   ;;  %v554_v6 = vmov 0.0   ;;  %s660_s0 = inlined_call_operand.vmem [shape: f32[8,32], index: 0, kind: input, shape index: {}]   ;;  %s661_s1 = inlined_call_operand.vmem [shape: f32[8,32], index: 1, kind: input, shape index: {}]   ;;  %s662_s2 = inlined_call_operand.vmem [shape: f32[32,64], index: 2, kind: input, shape index: {}]   ;;  %s663_s3 = inlined_call_operand.vmem [shape: f32[1,64], index: 3, kind: input, shape index: {}]   ;;  %s664_s4 = inlined_call_operand.vmem [shape: f32[64,32], index: 4, kind: input, shape index: {}]   ;;  %s665_s5 = inlined_call_operand.vmem [shape: f32[1,32], index: 5, kind: input, shape index: {}]   ;;  %s666_s6 = inlined_call_operand.hbm [shape: f32[1,8], index: 6, kind: output, shape index: {}]  }
   0x1   :  { %v24_v0 = vld [vmem:[%s662_s2] sm:$0xff]  ;;  %v25_v1 = vld [vmem:[%s662_s2 + $0x8] sm:$0xff]  ;;  %v26_v2 = vld [vmem:[%s662_s2 + $0x10] sm:$0xff]  ;;  %484 = vmatprep.subr.bf16.mxu1 %v552_v3  ;;  %502 = vmatprep.subr.bf16.mxu0 %v552_v3 }
   0x2   :  { %v485_v4 = vpack.c.bf16 %v25_v1, %v24_v0  ;;  %v27_v5 = vld [vmem:[%s662_s2 + $0x18] sm:$0xff]  ;;  %432 = vmatprep.mubr.msk.f32.mxu1 %vm553_vm0, %v554_v6  ;;  %462 = vmatprep.mubr.msk.f32.mxu0 %vm553_vm0, %v554_v6  ;;  %v29_v8 = vld [vmem:[%s664_s4] sm:$0xff]  ;;  %v30_v9 = vld [vmem:[%s664_s4 + $0x8] sm:$0xff] }
   0x3   :  { %v488_v7 = vpack.c.bf16 %v27_v5, %v26_v2 }
   0x4   :  { %486 = vmatpush3.bf16.msra.mxu1 %v485_v4  ;;  %504 = vmatpush3.bf16.msra.mxu0 %v485_v4 }
   0x5   :  { %487 = vmatprep.subr.bf16.mxu1 %v552_v3  ;;  %505 = vmatprep.subr.bf16.mxu0 %v552_v3 }
   0x6   :  { %11 = vsyncpa [#allocation3], 0  ;;  %v38_v10 = vld [vmem:[%s660_s0] sm:$0xff]  ;;  %vm45_vm1 = vcmask 261120   ;;  %v491_v12 = vpack.c.bf16 %v30_v9, %v29_v8  ;;  %v31_v13 = vld [vmem:[%s664_s4 + $0x10] sm:$0xff]  ;;  %vm126_vm2 = vcmask 523264   ;;  %v367_v48 = vlaneseq }
   0x7   :  { %v200_v11 = vld [vmem:[%s661_s1] sm:$0xff]  ;;  %v32_v14 = vld [vmem:[%s664_s4 + $0x18] sm:$0xff]  ;;  %v34_v17 = vld [vmem:[%s664_s4 + $0x28] sm:$0xff]  ;;  %vm374_vm3 = vcmask 57344  }
   0x8   :  { %489 = vmatpush3.bf16.msra.mxu1 %v488_v7  ;;  %507 = vmatpush3.bf16.msra.mxu0 %v488_v7  ;;  %v494_v15 = vpack.c.bf16 %v32_v14, %v31_v13  ;;  %v33_v16 = vld [vmem:[%s664_s4 + $0x20] sm:$0xff]  ;;  %v35_v19 = vld [vmem:[%s664_s4 + $0x30] sm:$0xff]  ;;  %v36_v20 = vld [vmem:[%s664_s4 + $0x38] sm:$0xff]  ;;  %v368_v49 = vand.u32 127, %v367_v48  ;;  %v370_v50 = vshrl.u32 %v367_v48, 7 }
   0x9   :  { %490 = vmatprep.subr.bf16.mxu1 %v552_v3  ;;  %508 = vmatprep.subr.bf16.mxu0 %v552_v3  ;;  %v497_v18 = vpack.c.bf16 %v34_v17, %v33_v16  ;;  %v500_v21 = vpack.c.bf16 %v36_v20, %v35_v19  ;;  %v390_v22 = vld [vmem:[%s663_s3] ss:$0 sm:$0xff]  ;;  %s555_s3 = smov [#allocation2]  }
   0xa   :  { %v392_v31 = vld [vmem:[%s665_s5] ss:$0 sm:$0xff]  ;;  %v371_v54 = vsub.s32 %v368_v49, %v370_v50  ;;  %s382_s5 = sshll.u32 %s555_s3, 4  ;;  %s383_s5 = int_to_ptr.vmem [resolvable:$true] %s382_s5 }
   0xb   :  { %433 = vmatmul.mubr.msk.f32.vlgmr.msra.gmra.mrb[0].mxu1 %vm45_vm1, %v38_v10  ;;  %463 = vmatmul.mubr.msk.f32.vlgmr.msra.gmra.mrb[0].mxu0 %vm45_vm1, %v200_v11  ;;  %s528_s25 = scalar_lea.vmem %s383_s5, 16  ;;  %s532_s26 = scalar_lea.vmem %s383_s5, 32 }
   0xc   :  { %492 = vmatpush3.bf16.msra.mxu1 %v491_v12  ;;  %510 = vmatpush3.bf16.msra.mxu0 %v491_v12  ;;  %p529_p0 = scmp.ne.s32.totalorder %s383_s5, %s528_s25  ;;  %p533_p1 = scmp.lt.s32.totalorder %s383_s5, %s383_s5 }
   0xd   :  { %493 = vmatprep.subr.bf16.mxu1 %v552_v3  ;;  %511 = vmatprep.subr.bf16.mxu0 %v552_v3  ;;  %p534_p2 = scmp.lt.s32.totalorder %s532_s26, %s528_s25 }
   0xe   :  { %451 = vmatprep.mubr.msk.f32.mxu1 %vm553_vm0, %v554_v6  ;;  %481 = vmatprep.mubr.msk.f32.mxu0 %vm553_vm0, %v554_v6 }
   0xf   :  { %p535_p3 = por %p534_p2, %p533_p1 }
  0x10   :  { %495 = vmatpush3.bf16.msra.mxu1 %v494_v15  ;;  %513 = vmatpush3.bf16.msra.mxu0 %v494_v15 }
  0x11   :  { %496 = vmatprep.subr.bf16.mxu1 %v552_v3  ;;  %514 = vmatprep.subr.bf16.mxu0 %v552_v3  ;;  %p536_p4 = pnand %p535_p3, %p529_p0 }
  0x14   :  { %498 = vmatpush3.bf16.msra.mxu1 %v497_v18  ;;  %516 = vmatpush3.bf16.msra.mxu0 %v497_v18 }
  0x15   :  { %499 = vmatprep.subr.bf16.mxu1 %v552_v3  ;;  %517 = vmatprep.subr.bf16.mxu0 %v552_v3 }
  0x18   :  { %501 = vmatpush3.bf16.msra.mxu1 %v500_v21  ;;  %519 = vmatpush3.bf16.msra.mxu0 %v500_v21 }
  0xde   :  { %v115_v23 = vpop.f32.mrb[0].mxu1  ;;  %v270_v24 = vpop.f32.mrb[0].mxu0 }
  0xdf   :  { %v116_v25 = vadd.f32 %v390_v22, %v115_v23  ;;  %v271_v26 = vadd.f32 %v390_v22, %v270_v24  ;;  %v434_v27 = vpop.f32.mrb[1].mxu1  ;;  %v464_v28 = vpop.f32.mrb[1].mxu0 }
  0xe1   :  { %v119_v29 = vmax.f32 %v116_v25, 0.0  ;;  %v274_v30 = vmax.f32 %v271_v26, 0.0 }
  0xe3   :  { %452 = vmatmul.mubr.msk.f32.vlgmr.msra.gmra.mrb[2].mxu1 %vm126_vm2, %v119_v29  ;;  %482 = vmatmul.mubr.msk.f32.vlgmr.msra.gmra.mrb[2].mxu0 %vm126_vm2, %v274_v30 }
 0x1b6   :  { %v196_v32 = vpop.f32.mrb[2].mxu1  ;;  %v344_v33 = vpop.f32.mrb[2].mxu0 }
 0x1b7   :  { %v197_v34 = vadd.f32 %v392_v31, %v196_v32  ;;  %v345_v35 = vadd.f32 %v392_v31, %v344_v33  ;;  %v453_v36 = vpop.f32.mrb[3].mxu1  ;;  %v483_v37 = vpop.f32.mrb[3].mxu0 }
 0x1b9   :  { %v356_v38 = vmul.f32 %v345_v35, %v197_v34  ;;  %v348_v39 = vmul.f32 %v197_v34, %v197_v34  ;;  %v352_v40 = vmul.f32 %v345_v35, %v345_v35 }
 0x1bb   :  { %v357_v41 = vsel %vm45_vm1, %v356_v38, 0.0  ;;  %v349_v42 = vsel %vm45_vm1, %v348_v39, 0.0  ;;  %v353_v43 = vsel %vm45_vm1, %v352_v40, 0.0 }
 0x1bc   :  { %358 = vadd.xlane.f32.xlu1 %v357_v41  ;;  %350 = vadd.xlane.f32.xlu0 %v349_v42 }
 0x1c0   :  { %354 = vadd.xlane.f32.xlu0 %v353_v43 }
 0x249   :  { %v351_v44 = vpop.xlane.xlu0 %350  ;;  %v359_v55 = vpop.xlane.xlu1 %358 }
 0x24a   :  { %v360_v45 = vmax.f32 %v351_v44, 1e-24 }
 0x24c   :  { %524 = vrsqrt.f32 %v360_v45 }
 0x24d   :  { %v355_v46 = vpop.xlane.xlu0 %354 }
 0x24e   :  { %v362_v47 = vmax.f32 %v355_v46, 1e-24 }
 0x250   :  { %526 = vrsqrt.f32 %v362_v47 }
 0x256   :  { %v525_v51 = vpop.eup %524 }
 0x25a   :  { %v527_v52 = vpop.eup %526 }
 0x25b   :  { %v364_v53 = vmul.f32 %v527_v52, %v525_v51 }
 0x25d   :  { %v365_v56 = vmul.f32 %v364_v53, %v359_v55 }
 0x25f   :  { %v372_v57 = vrot.slane %v365_v56, %v371_v54 }
 0x261   :  { %375 = vst.msk [vmem:[#allocation2] sm:$0x1] %vm374_vm3, %v372_v57 }
 0x262   :  { %539 = shalt.err (!%p536_p4)
}
 0x263   :  { %s540_s29 = scalar_lea.hbm %s666_s6, 16 }
 0x264   :  { %p541_p5 = scmp.ne.s32.totalorder %s666_s6, %s540_s29  ;;  %p544_p6 = scmp.lt.u32.totalorder %s540_s29, %s666_s6 }
 0x266   :  { %p546_p7 = pnand %p544_p6, %p541_p5 }
 0x268   :  { %549 = shalt.err (!%p546_p7)
}
 0x269   :  { %385 = dma.vmem_to_hbm [thread:$0]  %s383_s5, 16, %s666_s6, [#allocation3]  }
 0x26a   :  { %550 = dma.done.wait [#allocation3], 16  }
 0x26b   :  { %551 = vsyncadd [#allocation3], 4294967280 }
 0x26c   :  { %389 = vsyncpa [#allocation3], 1 }

</bundles_post_ra>
